<compile_context>
chip_gen: v6e
topology: v6e:2x2x1
jax: 0.10.0
libtpu: 0.0.40
codegen_flags: <defaults>
</compile_context>

<pallas_src>
import jax
import jax.numpy as jnp
from jax.experimental import pallas as pl
from jax.experimental.pallas import tpu as pltpu


def _round_up(x, m):
    return ((x + m - 1) // m) * m


def actor_kernel(x_ref, w1_ref, b1_ref, w2_ref, b2_ref, w3_ref, b3_ref, o_ref):
    # fc1 + relu  (bf16 MXU operands, f32 accumulate + f32 elementwise)
    x = x_ref[...].astype(jnp.bfloat16)                              # (TILE_B, d_in)
    h1 = jnp.dot(x, w1_ref[...], preferred_element_type=jnp.float32) + b1_ref[...]
    h1 = jnp.maximum(h1, 0.0).astype(jnp.bfloat16)                   # (TILE_B, F1_p)

    # fc2 + relu
    h2 = jnp.dot(h1, w2_ref[...], preferred_element_type=jnp.float32) + b2_ref[...]
    h2 = jnp.maximum(h2, 0.0).astype(jnp.bfloat16)                   # (TILE_B, F2_p)

    # pi head + sigmoid  (lane-dense store: A_p is a multiple of 128)
    logits = jnp.dot(h2, w3_ref[...], preferred_element_type=jnp.float32) + b3_ref[...]
    o_ref[...] = jax.nn.sigmoid(logits)                              # (TILE_B, A_p) f32


def prepare_actor_params(params):
    """Pad feature dims to multiples of 128 (exact zero padding) and cast the
    weight matrices to bf16 ONCE.  Call at init / after each optimizer step,
    NOT per forward.  The state's input feature dim is deliberately left
    un-padded (the kernel streams the raw d_in columns)."""
    d_in, f1 = params["w1"].shape
    f2 = params["w2"].shape[1]
    n_actions = params["w3"].shape[1]
    f1_p = _round_up(f1, 128)
    f2_p = _round_up(f2, 128)
    a_p = _round_up(n_actions, 128)

    def pad2(a, rows, cols):
        return jnp.pad(a, ((0, rows - a.shape[0]), (0, cols - a.shape[1])))

    return {
        "w1": pad2(params["w1"], d_in, f1_p).astype(jnp.bfloat16),
        "b1": pad2(params["b1"], 1, f1_p).astype(jnp.float32),
        "w2": pad2(params["w2"], f1_p, f2_p).astype(jnp.bfloat16),
        "b2": pad2(params["b2"], 1, f2_p).astype(jnp.float32),
        "w3": pad2(params["w3"], f2_p, a_p).astype(jnp.bfloat16),
        "b3": pad2(params["b3"], 1, a_p).astype(jnp.float32),
        "d_in": int(d_in),
        "n_actions": int(n_actions),
    }


def actor_forward(state, prep, *, tile_b=1024):
    """state: (B, input_dims) f32. prep: output of prepare_actor_params()."""
    B, d_in = state.shape
    assert d_in == prep["d_in"]
    n_actions = prep["n_actions"]
    w1, b1 = prep["w1"], prep["b1"]
    w2, b2 = prep["w2"], prep["b2"]
    w3, b3 = prep["w3"], prep["b3"]
    f1_p, f2_p, a_p = w1.shape[1], w2.shape[1], w3.shape[1]

    # --- rebalanced batch tiling: no mostly-padded trailing tile -------------
    b8 = _round_up(max(B, 1), 8)
    n_tiles = pl.cdiv(b8, tile_b)
    if n_tiles == 1 and b8 >= 256:
        n_tiles = 2                      # v7x: split the parallel axis over both TCs
    tile_b_eff = _round_up(pl.cdiv(b8, n_tiles), 8)
    b_p = n_tiles * tile_b_eff

    x = state.astype(jnp.float32)
    if b_p != B:
        x = jnp.pad(x, ((0, b_p - B), (0, 0)))

    # state/output tiles stream per grid step; weights use a constant index_map
    # so they stay VMEM-resident (DMA'd once).  The state block's last dim equals
    # the full array dim, so no feature-dim padding / DMA inflation is needed.
    n_in_buf = 3 if n_tiles >= 2 else 2
    state_spec = pl.BlockSpec((tile_b_eff, d_in), lambda i: (i, 0),
                              pipeline_mode=pl.Buffered(n_in_buf))
    out_spec = pl.BlockSpec((tile_b_eff, a_p), lambda i: (i, 0))
    const_spec = lambda a: pl.BlockSpec(a.shape, lambda i: (0, 0))

    # --- VMEM budget from actual buffer sizes (cap leaves compiler headroom) --
    io_bytes = (n_in_buf * tile_b_eff * d_in + 2 * tile_b_eff * a_p) * 4
    weight_bytes = 2 * ((w1.size + w2.size + w3.size) * 2
                        + (b1.size + b2.size + b3.size) * 4)
    act_bytes = tile_b_eff * (f1_p + f2_p + a_p) * 8   # f32 acc + bf16 copies slack
    vmem_limit = min(max(io_bytes + weight_bytes + act_bytes + (4 << 20), 8 << 20),
                     48 << 20)

    out = pl.pallas_call(
        actor_kernel,
        out_shape=jax.ShapeDtypeStruct((b_p, a_p), jnp.float32),
        grid=(n_tiles,),
        in_specs=[state_spec,
                  const_spec(w1), const_spec(b1),
                  const_spec(w2), const_spec(b2),
                  const_spec(w3), const_spec(b3)],
        out_specs=out_spec,
        compiler_params=pltpu.CompilerParams(
            dimension_semantics=("parallel",),
            vmem_limit_bytes=vmem_limit),
    )(x, w1, b1, w2, b2, w3, b3)

    return out[:B, :n_actions]


def init_actor_params(key, input_dims, fc1_dims, fc2_dims, n_actions):
    """Deterministic init mimicking torch.nn.Linear default
    (U[-1/sqrt(fan_in), +1/sqrt(fan_in)]). Weights stored as (in, out)."""
    ks = jax.random.split(key, 6)

    def lin(kw, kb, fan_in, fan_out):
        bound = 1.0 / jnp.sqrt(jnp.float32(fan_in))
        w = jax.random.uniform(kw, (fan_in, fan_out), jnp.float32, -bound, bound)
        b = jax.random.uniform(kb, (1, fan_out), jnp.float32, -bound, bound)
        return w, b

    w1, b1 = lin(ks[0], ks[1], input_dims, fc1_dims)
    w2, b2 = lin(ks[2], ks[3], fc1_dims, fc2_dims)
    w3, b3 = lin(ks[4], ks[5], fc2_dims, n_actions)
    return {"w1": w1, "b1": b1, "w2": w2, "b2": b2, "w3": w3, "b3": b3}


def _reference(state, p):
    h1 = jnp.maximum(state @ p["w1"] + p["b1"], 0.0)
    h2 = jnp.maximum(h1 @ p["w2"] + p["b2"], 0.0)
    return jax.nn.sigmoid(h2 @ p["w3"] + p["b3"])


if __name__ == "__main__":
    key = jax.random.PRNGKey(0)
    k_params, k_state, k_state_big = jax.random.split(key, 3)

    B, input_dims, fc1_dims, fc2_dims, n_actions = 2, 16, 64, 64, 8
    params = init_actor_params(k_params, input_dims, fc1_dims, fc2_dims, n_actions)
    prep = prepare_actor_params(params)   # pad + bf16 cast ONCE, outside forward

    # Small case (B=2), single tile.
    state = jax.random.normal(k_state, (B, input_dims), jnp.float32)
    pi = jax.block_until_ready(actor_forward(state, prep))
    ref = _reference(state, params)
    assert pi.shape == (B, n_actions)
    assert jnp.allclose(pi, ref, atol=2e-2, rtol=2e-2), float(jnp.max(jnp.abs(pi - ref)))

    # Larger batch: exercises the rebalanced 2-tile grid (2 x 152 rows for B=300),
    # the 3-deep input pipeline and the padded-row slicing path.
    B_big = 300
    state_big = jax.random.normal(k_state_big, (B_big, input_dims), jnp.float32)
    pi_big = jax.block_until_ready(actor_forward(state_big, prep))
    ref_big = _reference(state_big, params)
    assert pi_big.shape == (B_big, n_actions)
    assert jnp.allclose(pi_big, ref_big, atol=2e-2, rtol=2e-2), \
        float(jnp.max(jnp.abs(pi_big - ref_big)))

    print("KERNEL_OK")
</pallas_src>

<mosaic_0001>
module attributes {stable_mosaic.version = 11 : i64} {
  func.func @actor_kernel(%arg0: i32, %arg1: memref<8x16xf32, #tpu.memory_space<vmem>>, %arg2: memref<16x128xbf16, #tpu.memory_space<vmem>>, %arg3: memref<1x128xf32, #tpu.memory_space<vmem>>, %arg4: memref<128x128xbf16, #tpu.memory_space<vmem>>, %arg5: memref<1x128xf32, #tpu.memory_space<vmem>>, %arg6: memref<128x128xbf16, #tpu.memory_space<vmem>>, %arg7: memref<1x128xf32, #tpu.memory_space<vmem>>, %arg8: memref<8x128xf32, #tpu.memory_space<vmem>>) attributes {dimension_semantics = [#tpu.dimension_semantics<parallel>], iteration_bounds = array<i64: 1>, scalar_prefetch = 0 : i64, scratch_operands = 0 : i64, tpu.core_type = #tpu.core_type<tc>, window_params = [{pipeline_mode = #tpu.pipeline_mode<double_buffered>, transform_indices = @transform_0, window_bounds = array<i64: 8, 16>}, {pipeline_mode = #tpu.pipeline_mode<synchronous>, transform_indices = @transform_1, window_bounds = array<i64: 16, 128>}, {pipeline_mode = #tpu.pipeline_mode<synchronous>, transform_indices = @transform_2, window_bounds = array<i64: 1, 128>}, {pipeline_mode = #tpu.pipeline_mode<synchronous>, transform_indices = @transform_3, window_bounds = array<i64: 128, 128>}, {pipeline_mode = #tpu.pipeline_mode<synchronous>, transform_indices = @transform_4, window_bounds = array<i64: 1, 128>}, {pipeline_mode = #tpu.pipeline_mode<synchronous>, transform_indices = @transform_5, window_bounds = array<i64: 128, 128>}, {pipeline_mode = #tpu.pipeline_mode<synchronous>, transform_indices = @transform_6, window_bounds = array<i64: 1, 128>}, {transform_indices = @transform_7, window_bounds = array<i64: 8, 128>}]} {
    %c0 = arith.constant 0 : index
    %c0_0 = arith.constant 0 : index
    %0 = vector.load %arg1[%c0, %c0_0] : memref<8x16xf32, #tpu.memory_space<vmem>>, vector<8x16xf32>
    %1 = arith.truncf %0 : vector<8x16xf32> to vector<8x16xbf16>
    %c0_1 = arith.constant 0 : index
    %c0_2 = arith.constant 0 : index
    %2 = vector.load %arg2[%c0_1, %c0_2] : memref<16x128xbf16, #tpu.memory_space<vmem>>, vector<16x128xbf16>
    %cst = arith.constant dense<0.000000e+00> : vector<8x128xf32>
    %3 = tpu.matmul %1, %2, %cst {dimension_numbers = #tpu.dot_dimension_numbers<[1], [0], [0], [1], [0, 0, 1, 1], [], []>} : vector<8x16xbf16>, vector<16x128xbf16>, vector<8x128xf32> -> vector<8x128xf32>
    %c0_3 = arith.constant 0 : index
    %c0_4 = arith.constant 0 : index
    %4 = vector.load %arg3[%c0_3, %c0_4] : memref<1x128xf32, #tpu.memory_space<vmem>>, vector<1x128xf32>
    %5 = vector.broadcast %4 : vector<1x128xf32> to vector<8x128xf32>
    %6 = arith.addf %3, %5 : vector<8x128xf32>
    %cst_5 = arith.constant 0.000000e+00 : f32
    %7 = vector.broadcast %cst_5 : f32 to vector<8x128xf32>
    %8 = arith.maximumf %6, %7 : vector<8x128xf32>
    %9 = arith.truncf %8 : vector<8x128xf32> to vector<8x128xbf16>
    %c0_6 = arith.constant 0 : index
    %c0_7 = arith.constant 0 : index
    %10 = vector.load %arg4[%c0_6, %c0_7] : memref<128x128xbf16, #tpu.memory_space<vmem>>, vector<128x128xbf16>
    %cst_8 = arith.constant dense<0.000000e+00> : vector<8x128xf32>
    %11 = tpu.matmul %9, %10, %cst_8 {dimension_numbers = #tpu.dot_dimension_numbers<[1], [0], [0], [1], [0, 0, 1, 1], [], []>} : vector<8x128xbf16>, vector<128x128xbf16>, vector<8x128xf32> -> vector<8x128xf32>
    %c0_9 = arith.constant 0 : index
    %c0_10 = arith.constant 0 : index
    %12 = vector.load %arg5[%c0_9, %c0_10] : memref<1x128xf32, #tpu.memory_space<vmem>>, vector<1x128xf32>
    %13 = vector.broadcast %12 : vector<1x128xf32> to vector<8x128xf32>
    %14 = arith.addf %11, %13 : vector<8x128xf32>
    %cst_11 = arith.constant 0.000000e+00 : f32
    %15 = vector.broadcast %cst_11 : f32 to vector<8x128xf32>
    %16 = arith.maximumf %14, %15 : vector<8x128xf32>
    %17 = arith.truncf %16 : vector<8x128xf32> to vector<8x128xbf16>
    %c0_12 = arith.constant 0 : index
    %c0_13 = arith.constant 0 : index
    %18 = vector.load %arg6[%c0_12, %c0_13] : memref<128x128xbf16, #tpu.memory_space<vmem>>, vector<128x128xbf16>
    %cst_14 = arith.constant dense<0.000000e+00> : vector<8x128xf32>
    %19 = tpu.matmul %17, %18, %cst_14 {dimension_numbers = #tpu.dot_dimension_numbers<[1], [0], [0], [1], [0, 0, 1, 1], [], []>} : vector<8x128xbf16>, vector<128x128xbf16>, vector<8x128xf32> -> vector<8x128xf32>
    %c0_15 = arith.constant 0 : index
    %c0_16 = arith.constant 0 : index
    %20 = vector.load %arg7[%c0_15, %c0_16] : memref<1x128xf32, #tpu.memory_space<vmem>>, vector<1x128xf32>
    %21 = vector.broadcast %20 : vector<1x128xf32> to vector<8x128xf32>
    %22 = arith.addf %19, %21 : vector<8x128xf32>
    %23 = arith.negf %22 : vector<8x128xf32>
    %24 = math.exp %23 : vector<8x128xf32>
    %cst_17 = arith.constant 1.000000e+00 : f32
    %25 = vector.broadcast %cst_17 : f32 to vector<8x128xf32>
    %26 = arith.addf %25, %24 : vector<8x128xf32>
    %27 = arith.divf %25, %26 : vector<8x128xf32>
    %c0_18 = arith.constant 0 : index
    %c0_19 = arith.constant 0 : index
    %28 = vector.load %arg8[%c0_18, %c0_19] : memref<8x128xf32, #tpu.memory_space<vmem>>, vector<8x128xf32>
    tpu.vector_store %arg8[%c0_18, %c0_19], %27 {strides = array<i32>} : memref<8x128xf32, #tpu.memory_space<vmem>>, vector<8x128xf32>,
    return
  }
  func.func @transform_0(%arg0: i32) -> (i32, i32) {
    %c0_i32 = arith.constant 0 : i32
    %c0_i32_0 = arith.constant 0 : i32
    return %arg0, %c0_i32 : i32, i32
  }
  func.func @transform_1(%arg0: i32) -> (i32, i32) {
    %c0_i32 = arith.constant 0 : i32
    %c0_i32_0 = arith.constant 0 : i32
    %c0_i32_1 = arith.constant 0 : i32
    return %c0_i32, %c0_i32_0 : i32, i32
  }
  func.func @transform_2(%arg0: i32) -> (i32, i32) {
    %c0_i32 = arith.constant 0 : i32
    %c0_i32_0 = arith.constant 0 : i32
    %c0_i32_1 = arith.constant 0 : i32
    return %c0_i32, %c0_i32_0 : i32, i32
  }
  func.func @transform_3(%arg0: i32) -> (i32, i32) {
    %c0_i32 = arith.constant 0 : i32
    %c0_i32_0 = arith.constant 0 : i32
    %c0_i32_1 = arith.constant 0 : i32
    return %c0_i32, %c0_i32_0 : i32, i32
  }
  func.func @transform_4(%arg0: i32) -> (i32, i32) {
    %c0_i32 = arith.constant 0 : i32
    %c0_i32_0 = arith.constant 0 : i32
    %c0_i32_1 = arith.constant 0 : i32
    return %c0_i32, %c0_i32_0 : i32, i32
  }
  func.func @transform_5(%arg0: i32) -> (i32, i32) {
    %c0_i32 = arith.constant 0 : i32
    %c0_i32_0 = arith.constant 0 : i32
    %c0_i32_1 = arith.constant 0 : i32
    return %c0_i32, %c0_i32_0 : i32, i32
  }
  func.func @transform_6(%arg0: i32) -> (i32, i32) {
    %c0_i32 = arith.constant 0 : i32
    %c0_i32_0 = arith.constant 0 : i32
    %c0_i32_1 = arith.constant 0 : i32
    return %c0_i32, %c0_i32_0 : i32, i32
  }
  func.func @transform_7(%arg0: i32) -> (i32, i32) {
    %c0_i32 = arith.constant 0 : i32
    %c0_i32_0 = arith.constant 0 : i32
    return %arg0, %c0_i32 : i32, i32
  }
}

</mosaic_0001>

<bundles_post_ra>
// kernel: tpu_custom_call.1
= control target key start
LH: loop header
LB: loop body
LE: loop exit
PB: predicated region body
PF: predicated region fallthrough
CT: control target
= control target key end

     0   :  { %12 = vsyncpa [#allocation3], 0  ;;  %s720_s0 = inlined_call_operand.hbm [shape: f32[8,16], index: 0, kind: input, shape index: {}]   ;;  %s721_s1 = inlined_call_operand.hbm [shape: bf16[16,128], index: 1, kind: input, shape index: {}]   ;;  %s722_s2 = inlined_call_operand.vmem [shape: f32[1,128], index: 2, kind: input, shape index: {}]   ;;  %s723_s3 = inlined_call_operand.hbm [shape: bf16[128,128], index: 3, kind: input, shape index: {}]   ;;  %s724_s4 = inlined_call_operand.vmem [shape: f32[1,128], index: 4, kind: input, shape index: {}]   ;;  %s725_s5 = inlined_call_operand.hbm [shape: bf16[128,128], index: 5, kind: input, shape index: {}]   ;;  %s726_s6 = inlined_call_operand.vmem [shape: f32[1,128], index: 6, kind: input, shape index: {}]   ;;  %s727_s7 = inlined_call_operand.hbm [shape: f32[8,128], index: 7, kind: output, shape index: {}]  }
   0x1   :  { %13 = vsyncpa [#allocation6], 0 }
   0x2   :  { %14 = vsyncpa [#allocation9], 0 }
   0x3   :  { %15 = vsyncpa [#allocation4], 0  ;;  %s618_s24 = smov [#allocation5]  }
   0x4   :  { %s31_s25 = sshll.u32 %s618_s24, 4  ;;  %s32_s25 = int_to_ptr.vmem [resolvable:$true] %s31_s25 }
   0x5   :  { %s518_s26 = scalar_lea.vmem %s32_s25, 128  ;;  %p523_p1 = scmp.lt.s32.totalorder %s32_s25, %s32_s25 }
   0x6   :  { %p519_p0 = scmp.ne.s32.totalorder %s32_s25, %s518_s26  ;;  %p524_p2 = scmp.lt.s32.totalorder %s518_s26, %s518_s26 }
   0x8   :  { %p525_p3 = por %p524_p2, %p523_p1 }
   0xa   :  { %p526_p4 = pnand %p525_p3, %p519_p0 }
   0xc   :  { %529 = shalt.err (!%p526_p4)
}
   0xd   :  { %s619_s27 = smov 64   ;;  %s620_s28 = smov 4  }
   0xe   :  { %37 = dma.hbm_to_vmem [thread:$0]  %s721_s1, 128, %s32_s25, [#allocation6], %s619_s27, %s619_s27, %s620_s28  }
   0xf   :  { %s621_s8 = smov [#allocation2]   ;;  %s622_s10 = smov [#allocation7]  }
  0x10   :  { %s22_s9 = sshll.u32 %s621_s8, 4  ;;  %s45_s11 = sshll.u32 %s622_s10, 4  ;;  %s23_s9 = int_to_ptr.vmem [resolvable:$true] %s22_s9  ;;  %s46_s11 = int_to_ptr.vmem [resolvable:$true] %s45_s11 }
  0x11   :  { %s538_s12 = scalar_lea.vmem %s23_s9, 128  ;;  %p543_p6 = scmp.lt.s32.totalorder %s23_s9, %s23_s9 }
  0x12   :  { %p539_p5 = scmp.ne.s32.totalorder %s23_s9, %s538_s12  ;;  %p544_p7 = scmp.lt.s32.totalorder %s538_s12, %s538_s12 }
  0x14   :  { %p545_p8 = por %p544_p7, %p543_p6 }
  0x16   :  { %p546_p9 = pnand %p545_p8, %p539_p5 }
  0x18   :  { %549 = shalt.err (!%p546_p9)
}
  0x19   :  { %25 = dma.hbm_to_vmem [thread:$0]  %s720_s0, 128, %s23_s9, [#allocation3]  }
  0x1a   :  { %s558_s15 = scalar_lea.vmem %s46_s11, 1024  ;;  %p563_p11 = scmp.lt.s32.totalorder %s46_s11, %s46_s11 }
  0x1b   :  { %p559_p10 = scmp.ne.s32.totalorder %s46_s11, %s558_s15  ;;  %p564_p12 = scmp.lt.s32.totalorder %s558_s15, %s558_s15 }
  0x1d   :  { %p565_p13 = por %p564_p12, %p563_p11 }
  0x1f   :  { %p566_p0 = pnand %p565_p13, %p559_p10 }
  0x21   :  { %569 = shalt.err (!%p566_p0)
}
  0x22   :  { %51 = dma.hbm_to_vmem [thread:$0]  %s723_s3, 1024, %s46_s11, [#allocation6], %s619_s27, %s619_s27, %s620_s28  }
  0x23   :  { %s623_s17 = smov [#allocation8]  }
  0x24   :  { %s59_s18 = sshll.u32 %s623_s17, 4  ;;  %s60_s18 = int_to_ptr.vmem [resolvable:$true] %s59_s18 }
  0x25   :  { %s578_s19 = scalar_lea.vmem %s60_s18, 1024  ;;  %p583_p2 = scmp.lt.s32.totalorder %s60_s18, %s60_s18 }
  0x26   :  { %p579_p1 = scmp.ne.s32.totalorder %s60_s18, %s578_s19  ;;  %p584_p3 = scmp.lt.s32.totalorder %s578_s19, %s578_s19 }
  0x28   :  { %p585_p4 = por %p584_p3, %p583_p2 }
  0x2a   :  { %p586_p5 = pnand %p585_p4, %p579_p1 }
  0x2c   :  { %589 = shalt.err (!%p586_p5)
}
  0x2d   :  { %65 = dma.hbm_to_vmem [thread:$0]  %s725_s5, 1024, %s60_s18, [#allocation9], %s619_s27, %s619_s27, %s620_s28  }
  0x2e   :  { %610 = dma.done.wait [#allocation3], 128  }
  0x2f   :  { %611 = vsyncadd [#allocation3], 4294967168 }
  0x30   :  { %612 = dma.done.wait [#allocation6], 1152  }
  0x31   :  { %613 = vsyncadd [#allocation6], 4294966144 }
  0x32   :  { %614 = dma.done.wait [#allocation9], 1024  }
  0x33   :  { %615 = vsyncadd [#allocation9], 4294966272  ;;  %v624_v0 = vmov 0.0   ;;  %vm625_vm0 = vmmov 0   ;;  %v489_v1 = vld [vmem:[#allocation5] sm:$0xff]   ;;  %v81_v2 = vld [vmem:[#allocation2] sm:$0xff] }
  0x34   :  { %434 = vmatprep.subr.bf16.mxu0 %v624_v0  ;;  %436 = vmatprep.mubr.msk.bf16.mxu0 %vm625_vm0, %v624_v0  ;;  %v82_v3 = vpack.c.bf16 %v81_v2, %v81_v2  ;;  %vm98_vm1 = vcmask 130048   ;;  %v490_v4 = vld [vmem:[#allocation7 + $0x38] sm:$0xff]   ;;  %v491_v5 = vld [vmem:[#allocation7 + $0x30] sm:$0xff]   ;;  %v492_v6 = vld [vmem:[#allocation7 + $0x28] sm:$0xff]  }
  0x35   :  { %440 = vmatprep.subr.bf16.mxu1 %v624_v0  ;;  %456 = vmatprep.mubr.msk.bf16.mxu1 %vm625_vm0, %v624_v0  ;;  %v493_v7 = vld [vmem:[#allocation7 + $0x20] sm:$0xff]   ;;  %v494_v8 = vld [vmem:[#allocation7 + $0x18] sm:$0xff]   ;;  %v495_v9 = vld [vmem:[#allocation7 + $0x10] sm:$0xff]  }
  0x36   :  { %435 = vmatpush3.bf16.msra.mxu0 %v489_v1  ;;  %441 = vmatpush3.bf16.msra.mxu1 %v490_v4  ;;  %v496_v10 = vld [vmem:[#allocation7 + $0x8] sm:$0xff]   ;;  %v497_v11 = vld [vmem:[#allocation7] sm:$0xff]   ;;  %v498_v12 = vld [vmem:[#allocation8 + $0x38] sm:$0xff]  }
  0x37   :  { %460 = vmatprep.subr.bf16.mxu0 %v624_v0  ;;  %442 = vmatprep.subr.bf16.mxu1 %v624_v0  ;;  %v499_v13 = vld [vmem:[#allocation8 + $0x30] sm:$0xff]   ;;  %v500_v14 = vld [vmem:[#allocation8 + $0x28] sm:$0xff]   ;;  %v501_v15 = vld [vmem:[#allocation8 + $0x20] sm:$0xff]  }
  0x38   :  { %v502_v16 = vld [vmem:[#allocation8 + $0x18] sm:$0xff]   ;;  %v503_v17 = vld [vmem:[#allocation8 + $0x10] sm:$0xff]   ;;  %v504_v26 = vld [vmem:[#allocation8 + $0x8] sm:$0xff]  }
  0x39   :  { %437 = vmatmul.mubr.msk.bf16.vlgmr.msra.gmra.mxu0 %vm98_vm1, %v82_v3  ;;  %v392_v18 = vld [vmem:[%s722_s2] ss:$0 sm:$0xff]  ;;  %v505_v27 = vld [vmem:[#allocation8] sm:$0xff]  }
  0x3a   :  { %476 = vmatprep.mubr.msk.bf16.mxu0 %vm625_vm0, %v624_v0  ;;  %443 = vmatpush3.bf16.msra.mxu1 %v491_v5  ;;  %v395_v28 = vld [vmem:[%s724_s4] ss:$0 sm:$0xff]  ;;  %s626_s4 = smov [#allocation10]  }
  0x3b   :  { %444 = vmatprep.subr.bf16.mxu1 %v624_v0  ;;  %461 = vmatpush3.bf16.msra.mxu0 %v498_v12  ;;  %v404_v36 = vld [vmem:[%s726_s6] ss:$0 sm:$0xff]  ;;  %s381_s24 = sshll.u32 %s626_s4, 4  ;;  %s382_s24 = int_to_ptr.vmem [resolvable:$true] %s381_s24 }
  0x3c   :  { %462 = vmatprep.subr.bf16.mxu0 %v624_v0  ;;  %s590_s25 = scalar_lea.vmem %s382_s24, 128  ;;  %p595_p7 = scmp.lt.s32.totalorder %s382_s24, %s382_s24 }
  0x3d   :  { %p591_p6 = scmp.ne.s32.totalorder %s382_s24, %s590_s25  ;;  %p596_p8 = scmp.lt.s32.totalorder %s590_s25, %s590_s25 }
  0x3e   :  { %445 = vmatpush3.bf16.msra.mxu1 %v492_v6 }
  0x3f   :  { %446 = vmatprep.subr.bf16.mxu1 %v624_v0  ;;  %463 = vmatpush3.bf16.msra.mxu0 %v499_v13  ;;  %p597_p9 = por %p596_p8, %p595_p7 }
  0x40   :  { %464 = vmatprep.subr.bf16.mxu0 %v624_v0 }
  0x41   :  { %p598_p10 = pnand %p597_p9, %p591_p6 }
  0x42   :  { %447 = vmatpush3.bf16.msra.mxu1 %v493_v7 }
  0x43   :  { %448 = vmatprep.subr.bf16.mxu1 %v624_v0  ;;  %465 = vmatpush3.bf16.msra.mxu0 %v500_v14 }
  0x44   :  { %466 = vmatprep.subr.bf16.mxu0 %v624_v0 }
  0x46   :  { %449 = vmatpush3.bf16.msra.mxu1 %v494_v8 }
  0x47   :  { %450 = vmatprep.subr.bf16.mxu1 %v624_v0  ;;  %467 = vmatpush3.bf16.msra.mxu0 %v501_v15 }
  0x48   :  { %468 = vmatprep.subr.bf16.mxu0 %v624_v0 }
  0x4a   :  { %451 = vmatpush3.bf16.msra.mxu1 %v495_v9 }
  0x4b   :  { %452 = vmatprep.subr.bf16.mxu1 %v624_v0  ;;  %469 = vmatpush3.bf16.msra.mxu0 %v502_v16 }
  0x4c   :  { %470 = vmatprep.subr.bf16.mxu0 %v624_v0 }
  0x4e   :  { %453 = vmatpush3.bf16.msra.mxu1 %v496_v10 }
  0x4f   :  { %454 = vmatprep.subr.bf16.mxu1 %v624_v0  ;;  %471 = vmatpush3.bf16.msra.mxu0 %v503_v17 }
  0x50   :  { %472 = vmatprep.subr.bf16.mxu0 %v624_v0 }
  0x52   :  { %455 = vmatpush3.bf16.msra.mxu1 %v497_v11 }
  0x53   :  { %473 = vmatpush3.bf16.msra.mxu0 %v504_v26 }
  0x54   :  { %474 = vmatprep.subr.bf16.mxu0 %v624_v0 }
  0x57   :  { %475 = vmatpush3.bf16.msra.mxu0 %v505_v27 }
  0xf9   :  { %v136_v19 = vpop.f32.mrf.mxu0 }
  0xfa   :  { %v137_v20 = vadd.f32 %v392_v18, %v136_v19 }
  0xfb   :  { %v438_v21 = vpop.f32.mrf.mxu0 }
  0xfc   :  { %v142_v22 = vmax.f32 %v137_v20, 0.0 }
  0xfd   :  { %v139_v23 = vpop.f32.mrf.mxu0 }
  0xfe   :  { %v143_v24 = vpack.c.bf16 %v142_v22, %v142_v22 }
  0xff   :  { %v439_v25 = vpop.f32.mrf.mxu0 }
 0x100   :  { %457 = vmatmul.mubr.bf16.vlgmr.msra.gmra.mxu1 %v143_v24 }
 0x1c0   :  { %v249_v29 = vpop.f32.mrf.mxu1 }
 0x1c1   :  { %v250_v30 = vadd.f32 %v395_v28, %v249_v29 }
 0x1c2   :  { %v458_v31 = vpop.f32.mrf.mxu1 }
 0x1c3   :  { %v255_v32 = vmax.f32 %v250_v30, 0.0 }
 0x1c4   :  { %v252_v33 = vpop.f32.mrf.mxu1 }
 0x1c5   :  { %v256_v34 = vpack.c.bf16 %v255_v32, %v255_v32 }
 0x1c6   :  { %v459_v35 = vpop.f32.mrf.mxu1 }
 0x1c7   :  { %477 = vmatmul.mubr.bf16.vlgmr.msra.gmra.mxu0 %v256_v34 }
 0x287   :  { %v362_v37 = vpop.f32.mrf.mxu0 }
 0x288   :  { %v363_v38 = vadd.f32 %v404_v36, %v362_v37 }
 0x289   :  { %v478_v39 = vpop.f32.mrf.mxu0 }
 0x28a   :  { %v413_v40 = vmul.f32 -1.442695, %v363_v38 }
 0x28b   :  { %v365_v41 = vpop.f32.mrf.mxu0 }
 0x28c   :  { %506 = vpow2.f32 %v413_v40 }
 0x28d   :  { %v479_v42 = vpop.f32.mrf.mxu0 }
 0x299   :  { %v507_v43 = vpop.eup %506 }
 0x29a   :  { %v371_v44 = vadd.f32 1.0, %v507_v43 }
 0x29c   :  { %508 = vrcp.f32 %v371_v44 }
 0x2a9   :  { %v509_v45 = vpop.eup %508 }
 0x2aa   :  { %374 = vst [vmem:[#allocation10] sm:$0xff] %v509_v45 }
 0x2ab   :  { %601 = shalt.err (!%p598_p10)
}
 0x2ac   :  { %384 = dma.vmem_to_hbm [thread:$0]  %s382_s24, 128, %s727_s7, [#allocation4]  }
 0x2ad   :  { %616 = dma.done.wait [#allocation4], 128  }
 0x2ae   :  { %617 = vsyncadd [#allocation4], 4294967168 }
 0x2af   :  { %388 = vsyncpa [#allocation3], 1 }
 0x2b0   :  { %389 = vsyncpa [#allocation6], 1 }
 0x2b1   :  { %390 = vsyncpa [#allocation9], 1 }
 0x2b2   :  { %391 = vsyncpa [#allocation4], 1 }

</bundles_post_ra>
